<compile_context>
chip_gen: v5e
topology: v5e:2x2
jax: 0.10.0
libtpu: 0.0.40
codegen_flags: <defaults>
</compile_context>

<pallas_src>
import functools

import jax
import jax.numpy as jnp
import numpy as np
from jax.experimental import pallas as pl
from jax.experimental.pallas import tpu as pltpu


# ----------------------------------------------------------------------------
# Pallas kernel
# ----------------------------------------------------------------------------
def bilstm_l2_kernel(x_ref, wih_ref, whh_ref, b_ref, out_ref, xg_ref, *, L):
    """Fused bidirectional LSTM + channel-wise L2 norm for one N-tile.

    x_ref:   (L*TN, E)   embedded inputs, rows ordered (time s, row n) = s*TN + n
    wih_ref: (E, 8H)     packed input weights, gate-major cols [i_f i_b|f_f f_b|g_f g_b|o_f o_b]
    whh_ref: (2H, 8H)    block-diagonal recurrent weights, same column order
    b_ref:   (1, 8H)     combined biases (b_ih + b_hh), same column order
    out_ref: (TN, L*2H)  lane-dense output: L time-blocks of 2H channels, L2-normalized
    xg_ref:  (L*TN, 8H)  VMEM scratch holding the hoisted input projection
    """
    LTN, E = x_ref.shape
    TN = LTN // L
    G = xg_ref.shape[-1]          # 8H
    twoH = G // 4                 # 2H
    H = twoH // 2

    # ---- Hoisted input projection + bias: one batched MXU call for all L steps
    # (f32 operands; off the serial critical path, keeps recurrence inputs accurate).
    xg_ref[...] = (
        jnp.dot(x_ref[...], wih_ref[...], preferred_element_type=jnp.float32)
        + b_ref[...]
    )

    # ---- per-lane constants (computed once, reused every step) ----
    lane = jax.lax.broadcasted_iota(jnp.int32, (TN, G), 1)
    is_g = (lane >= 2 * twoH) & (lane < 3 * twoH)        # 'g' gate block -> tanh
    is_fwd = (lane % twoH) < H                           # forward-direction lanes
    # sigmoid(x) = 0.5 * (1 + tanh(x/2)):  act = tanh(gates*pre_s) * post_s + post_o
    pre_s = jnp.where(is_g, 1.0, 0.5).astype(jnp.float32)
    post_s = pre_s
    post_o = jnp.where(is_g, 0.0, 0.5).astype(jnp.float32)

    # Recurrent weights in bf16: single-pass MXU input; accumulate in f32.
    whh = whh_ref[...].astype(jnp.bfloat16)

    h = jnp.zeros((TN, twoH), jnp.float32)               # [h_fwd | h_bwd], in vregs
    c = jnp.zeros((TN, twoH), jnp.float32)

    hs = []
    # Fully unrolled static time loop: per-step critical path is
    # 1 bf16 MXU dot + 2 EUP tanh passes + a few VPU ops.
    for s in range(L):
        # fwd lanes use x_s, bwd lanes use x_{L-1-s} (select is off the serial chain)
        xin = jnp.where(
            is_fwd,
            xg_ref[pl.ds(s * TN, TN), :],
            xg_ref[pl.ds((L - 1 - s) * TN, TN), :],
        )                                                 # (TN, 8H)
        gates = xin + jnp.dot(
            h.astype(jnp.bfloat16), whh, preferred_element_type=jnp.float32
        )                                                 # (TN, 8H) lane-dense
        t = jnp.tanh(gates * pre_s)                       # single full-width tanh
        act = t * post_s + post_o
        i = act[:, 0 * twoH:1 * twoH]
        f = act[:, 1 * twoH:2 * twoH]
        g = act[:, 2 * twoH:3 * twoH]
        o = act[:, 3 * twoH:4 * twoH]
        c = f * c + i * g
        h = o * jnp.tanh(c)
        hs.append(h)

    # ---- Epilogue: assemble time-major output, L2-normalize, one unmasked store.
    # Output at time t = [h_fwd from step t | h_bwd from step L-1-t].
    outs = []
    for t_idx in range(L):
        ht = jnp.concatenate(
            [hs[t_idx][:, 0:H], hs[L - 1 - t_idx][:, H:twoH]], axis=-1
        )                                                 # (TN, 2H)
        ss = jnp.sum(ht * ht, axis=-1, keepdims=True)
        # 1 / max(norm, 1e-8) == rsqrt(max(ss, 1e-16))   (EUP, no VPU divide)
        ht = ht * jax.lax.rsqrt(jnp.maximum(ss, 1e-16))
        outs.append(ht)
    out_ref[...] = jnp.concatenate(outs, axis=-1)         # (TN, L*2H), lane-dense


# ----------------------------------------------------------------------------
# Weight packing helpers (one-time, plain JAX)
# ----------------------------------------------------------------------------
def _pack_input_weights(w_f, w_b):
    """w_*: (4H, E) PyTorch rows [i; f; g; o]. Returns (E, 8H) with gate-major
    columns [i_f i_b | f_f f_b | g_f g_b | o_f o_b] (both directions read the same x)."""
    E = w_f.shape[1]
    H = w_f.shape[0] // 4
    gf = w_f.T.reshape(E, 4, H)
    gb = w_b.T.reshape(E, 4, H)
    return jnp.concatenate([gf, gb], axis=-1).reshape(E, 8 * H)


def _pack_recurrent_weights(w_f, w_b):
    """w_*: (4H, H). Returns (2H, 8H) block-diagonal: h_fwd rows feed forward gate
    columns only, h_bwd rows feed backward gate columns only (gate-major columns)."""
    H = w_f.shape[1]
    gf = w_f.T.reshape(H, 4, H)
    gb = w_b.T.reshape(H, 4, H)
    zero = jnp.zeros((H, 4, H), w_f.dtype)
    top = jnp.concatenate([gf, zero], axis=-1)
    bot = jnp.concatenate([zero, gb], axis=-1)
    return jnp.concatenate([top, bot], axis=0).reshape(2 * H, 8 * H)


def _gatewise_bias(bih_f, bhh_f, bih_b, bhh_b):
    H = bih_f.shape[0] // 4
    bf = (bih_f + bhh_f).reshape(4, H)
    bb = (bih_b + bhh_b).reshape(4, H)
    return jnp.concatenate([bf, bb], axis=-1).reshape(1, 8 * H)


# ----------------------------------------------------------------------------
# Module forward
# ----------------------------------------------------------------------------
def lstm_module_forward(input_ids, embeddings, lstm_params, output_size):
    """Mirrors LSTM.forward:
      input_ids: (B, S, L) int32
      returns    (B, S, output_size, L) float32, L2-normalized over dim=2.
    """
    B, S, L = input_ids.shape
    N = B * S
    H = output_size // 2
    E = embeddings.shape[1]

    ids = input_ids.reshape(N, L)
    # Embedding gather (frozen table) — glue, done in plain JAX.
    x = jnp.take(embeddings, ids, axis=0).astype(jnp.float32)    # (N, L, E)
    # Dropout is identity at inference (and nn.LSTM dropout is a no-op with
    # num_layers=1), so it is omitted.
    # TODO(synk): training-mode dropout masks not implemented (inference semantics).

    # N-tile: vreg-resident per-step h list wants small tiles; pad N to a multiple.
    n_pad = ((N + 7) // 8) * 8
    TN = min(64, n_pad)
    n_pad = ((n_pad + TN - 1) // TN) * TN
    n_tiles = n_pad // TN
    if n_pad != N:
        x = jnp.pad(x, ((0, n_pad - N), (0, 0), (0, 0)))         # (n_pad, L, E)

    # Tile-major row order so each grid step reads one contiguous (L*TN, E) slab,
    # ordered (time s, row n) inside the tile. Pure wrapper layout plumbing.
    x_tiles = (
        x.reshape(n_tiles, TN, L, E).transpose(0, 2, 1, 3).reshape(n_tiles * L * TN, E)
    )

    wih_f, whh_f, bih_f, bhh_f = lstm_params["fwd"]
    wih_b, whh_b, bih_b, bhh_b = lstm_params["bwd"]
    wih_pack = _pack_input_weights(wih_f, wih_b)          # (E, 8H)
    whh_pack = _pack_recurrent_weights(whh_f, whh_b)      # (2H, 8H)
    b_pack = _gatewise_bias(bih_f, bhh_f, bih_b, bhh_b)   # (1, 8H)

    kernel = functools.partial(bilstm_l2_kernel, L=L)
    out = pl.pallas_call(
        kernel,
        out_shape=jax.ShapeDtypeStruct((n_pad, L * 2 * H), jnp.float32),
        grid=(n_tiles,),
        in_specs=[
            pl.BlockSpec((L * TN, E), lambda i: (i, 0)),
            pl.BlockSpec((E, 8 * H), lambda i: (0, 0)),
            pl.BlockSpec((2 * H, 8 * H), lambda i: (0, 0)),
            pl.BlockSpec((1, 8 * H), lambda i: (0, 0)),
        ],
        out_specs=pl.BlockSpec((TN, L * 2 * H), lambda i: (i, 0)),
        scratch_shapes=[pltpu.VMEM((L * TN, 8 * H), jnp.float32)],
        compiler_params=pltpu.CompilerParams(
            dimension_semantics=("parallel",),   # pipelined; shards across v7x's 2 TCs
            vmem_limit_bytes=32 * 1024 * 1024,
        ),
    )(x_tiles, wih_pack, whh_pack, b_pack)

    out = out[:N].reshape(N, L, 2 * H)       # (N, L, 2H), already L2-normalized
    out = jnp.transpose(out, (0, 2, 1))      # (N, 2H, L) == transpose(output, 1, 2)
    return out.reshape(B, S, output_size, L)


# ----------------------------------------------------------------------------
# Pure-JAX reference (for verification)
# ----------------------------------------------------------------------------
def ref_lstm_direction(x_nle, wih, whh, bih, bhh, reverse):
    N, L, E = x_nle.shape
    H = whh.shape[-1]

    def step(carry, x_t):
        h, c = carry
        gates = x_t @ wih.T + bih + h @ whh.T + bhh
        i, f, g, o = jnp.split(gates, 4, axis=-1)
        i = jax.nn.sigmoid(i)
        f = jax.nn.sigmoid(f)
        g = jnp.tanh(g)
        o = jax.nn.sigmoid(o)
        c = f * c + i * g
        h = o * jnp.tanh(c)
        return (h, c), h

    xs = jnp.transpose(x_nle, (1, 0, 2))
    if reverse:
        xs = xs[::-1]
    h0 = jnp.zeros((N, H), jnp.float32)
    _, hs = jax.lax.scan(step, (h0, h0), xs)
    if reverse:
        hs = hs[::-1]
    return jnp.transpose(hs, (1, 0, 2))  # (N, L, H)


def ref_forward(input_ids, embeddings, lstm_params, output_size):
    B, S, L = input_ids.shape
    N = B * S
    ids = input_ids.reshape(N, L)
    x = jnp.take(embeddings, ids, axis=0).astype(jnp.float32)
    of = ref_lstm_direction(x, *lstm_params["fwd"], reverse=False)
    ob = ref_lstm_direction(x, *lstm_params["bwd"], reverse=True)
    out = jnp.concatenate([of, ob], axis=-1)        # (N, L, 2H)
    xc = jnp.transpose(out, (0, 2, 1)).reshape(B, S, output_size, L)
    l2 = jnp.sqrt(jnp.sum(xc * xc, axis=2, keepdims=True))
    return xc / jnp.maximum(l2, 1e-8)


# ----------------------------------------------------------------------------
# Main
# ----------------------------------------------------------------------------
if __name__ == "__main__":
    vocab_size = 50
    embed_dim = 16
    output_size = 32        # hidden per direction = 16
    H = output_size // 2
    B, S, L = 2, 3, 8

    key = jax.random.PRNGKey(0)
    k_emb, k_ids, *k_w = jax.random.split(key, 11)

    embeddings = jax.random.normal(k_emb, (vocab_size, embed_dim), jnp.float32)
    input_ids = jax.random.randint(k_ids, (B, S, L), 0, vocab_size, jnp.int32)

    scale = 1.0 / np.sqrt(H)

    def uni(k, shape):
        return jax.random.uniform(k, shape, jnp.float32, -scale, scale)

    lstm_params = {
        "fwd": (
            uni(k_w[0], (4 * H, embed_dim)),  # W_ih
            uni(k_w[1], (4 * H, H)),          # W_hh
            uni(k_w[2], (4 * H,)),            # b_ih
            uni(k_w[3], (4 * H,)),            # b_hh
        ),
        "bwd": (
            uni(k_w[4], (4 * H, embed_dim)),
            uni(k_w[5], (4 * H, H)),
            uni(k_w[6], (4 * H,)),
            uni(k_w[7], (4 * H,)),
        ),
    }

    fwd = jax.jit(functools.partial(lstm_module_forward, output_size=output_size))
    out = fwd(input_ids, embeddings, lstm_params)
    out = jax.block_until_ready(out)

    ref = ref_forward(input_ids, embeddings, lstm_params, output_size)
    # Tolerance relaxed to 5e-3: the recurrent h@W_hh dot uses bf16 MXU operands
    # (f32 accumulate), which compounds small rounding over the L=8 steps.
    np.testing.assert_allclose(np.asarray(out), np.asarray(ref), rtol=5e-3, atol=5e-3)
    assert out.shape == (B, S, output_size, L)

    print("KERNEL_OK")
</pallas_src>

<mosaic_0001>
module attributes {stable_mosaic.version = 11 : i64} {
  func.func @bilstm_l2_kernel(%arg0: i32, %arg1: memref<64x16xf32, #tpu.memory_space<vmem>>, %arg2: memref<16x128xf32, #tpu.memory_space<vmem>>, %arg3: memref<32x128xf32, #tpu.memory_space<vmem>>, %arg4: memref<1x128xf32, #tpu.memory_space<vmem>>, %arg5: memref<8x256xf32, #tpu.memory_space<vmem>>, %arg6: memref<64x128xf32, #tpu.memory_space<vmem>>) attributes {dimension_semantics = [#tpu.dimension_semantics<parallel>], iteration_bounds = array<i64: 1>, scalar_prefetch = 0 : i64, scratch_operands = 1 : i64, tpu.core_type = #tpu.core_type<tc>, window_params = [{transform_indices = @transform_0, window_bounds = array<i64: 64, 16>}, {pipeline_mode = #tpu.pipeline_mode<synchronous>, transform_indices = @transform_1, window_bounds = array<i64: 16, 128>}, {pipeline_mode = #tpu.pipeline_mode<synchronous>, transform_indices = @transform_2, window_bounds = array<i64: 32, 128>}, {pipeline_mode = #tpu.pipeline_mode<synchronous>, transform_indices = @transform_3, window_bounds = array<i64: 1, 128>}, {transform_indices = @transform_4, window_bounds = array<i64: 8, 256>}]} {
    %c0 = arith.constant 0 : index
    %c0_0 = arith.constant 0 : index
    %0 = vector.load %arg1[%c0, %c0_0] : memref<64x16xf32, #tpu.memory_space<vmem>>, vector<64x16xf32>
    %c0_1 = arith.constant 0 : index
    %c0_2 = arith.constant 0 : index
    %1 = vector.load %arg2[%c0_1, %c0_2] : memref<16x128xf32, #tpu.memory_space<vmem>>, vector<16x128xf32>
    %cst = arith.constant dense<0.000000e+00> : vector<64x128xf32>
    %2 = tpu.matmul %0, %1, %cst {dimension_numbers = #tpu.dot_dimension_numbers<[1], [0], [0], [1], [0, 0, 1, 1], [], []>} : vector<64x16xf32>, vector<16x128xf32>, vector<64x128xf32> -> vector<64x128xf32>
    %c0_3 = arith.constant 0 : index
    %c0_4 = arith.constant 0 : index
    %3 = vector.load %arg4[%c0_3, %c0_4] : memref<1x128xf32, #tpu.memory_space<vmem>>, vector<1x128xf32>
    %4 = vector.broadcast %3 : vector<1x128xf32> to vector<64x128xf32>
    %5 = arith.addf %2, %4 : vector<64x128xf32>
    %c0_5 = arith.constant 0 : index
    %c0_6 = arith.constant 0 : index
    %6 = vector.load %arg6[%c0_5, %c0_6] : memref<64x128xf32, #tpu.memory_space<vmem>>, vector<64x128xf32>
    tpu.vector_store %arg6[%c0_5, %c0_6], %5 {strides = array<i32>} : memref<64x128xf32, #tpu.memory_space<vmem>>, vector<64x128xf32>,
    %7 = tpu.iota {dimensions = array<i32: 1>} : vector<8x128xi32>
    %c64_i32 = arith.constant 64 : i32
    %8 = vector.broadcast %c64_i32 : i32 to vector<8x128xi32>
    %9 = arith.cmpi sge, %7, %8 : vector<8x128xi32>
    %c96_i32 = arith.constant 96 : i32
    %10 = vector.broadcast %c96_i32 : i32 to vector<8x128xi32>
    %11 = arith.cmpi slt, %7, %10 : vector<8x128xi32>
    %12 = arith.andi %9, %11 : vector<8x128xi1>
    %c32_i32 = arith.constant 32 : i32
    %c0_i32 = arith.constant 0 : i32
    %13 = arith.cmpi eq, %c32_i32, %c0_i32 : i32
    %c1_i32 = arith.constant 1 : i32
    %14 = arith.select %13, %c1_i32, %c32_i32 : i32
    %15 = vector.broadcast %14 : i32 to vector<8x128xi32>
    %16 = arith.remsi %7, %15 : vector<8x128xi32>
    %c0_i32_7 = arith.constant 0 : i32
    %17 = vector.broadcast %c0_i32_7 : i32 to vector<8x128xi32>
    %18 = arith.cmpi ne, %16, %17 : vector<8x128xi32>
    %c0_i32_8 = arith.constant 0 : i32
    %19 = vector.broadcast %c0_i32_8 : i32 to vector<8x128xi32>
    %20 = arith.cmpi slt, %16, %19 : vector<8x128xi32>
    %c0_i32_9 = arith.constant 0 : i32
    %21 = arith.cmpi slt, %14, %c0_i32_9 : i32
    %22 = vector.broadcast %21 : i1 to vector<8x128xi1>
    %23 = vector.broadcast %22 : vector<8x128xi1> to vector<8x128xi1>
    %24 = arith.xori %20, %23 : vector<8x128xi1>
    %25 = arith.andi %24, %18 : vector<8x128xi1>
    %26 = vector.broadcast %14 : i32 to vector<8x128xi32>
    %27 = arith.addi %16, %26 : vector<8x128xi32>
    %28 = arith.select %25, %27, %16 : vector<8x128xi1>, vector<8x128xi32>
    %c16_i32 = arith.constant 16 : i32
    %29 = vector.broadcast %c16_i32 : i32 to vector<8x128xi32>
    %30 = arith.cmpi slt, %28, %29 : vector<8x128xi32>
    %cst_10 = arith.constant 1.000000e+00 : f32
    %cst_11 = arith.constant 5.000000e-01 : f32
    %31 = vector.broadcast %cst_10 : f32 to vector<8x128xf32>
    %32 = vector.broadcast %cst_11 : f32 to vector<8x128xf32>
    %33 = arith.select %12, %31, %32 : vector<8x128xi1>, vector<8x128xf32>
    %cst_12 = arith.constant 0.000000e+00 : f32
    %cst_13 = arith.constant 5.000000e-01 : f32
    %34 = vector.broadcast %cst_12 : f32 to vector<8x128xf32>
    %35 = vector.broadcast %cst_13 : f32 to vector<8x128xf32>
    %36 = arith.select %12, %34, %35 : vector<8x128xi1>, vector<8x128xf32>
    %c0_14 = arith.constant 0 : index
    %c0_15 = arith.constant 0 : index
    %37 = vector.load %arg3[%c0_14, %c0_15] : memref<32x128xf32, #tpu.memory_space<vmem>>, vector<32x128xf32>
    %38 = arith.truncf %37 : vector<32x128xf32> to vector<32x128xbf16>
    %cst_16 = arith.constant 0.000000e+00 : f32
    %39 = vector.broadcast %cst_16 : f32 to vector<8x32xf32>
    %cst_17 = arith.constant 0.000000e+00 : f32
    %40 = vector.broadcast %cst_17 : f32 to vector<8x32xf32>
    %c0_18 = arith.constant 0 : index
    %c0_19 = arith.constant 0 : index
    %41 = vector.load %arg6[%c0_18, %c0_19] : memref<64x128xf32, #tpu.memory_space<vmem>>, vector<8x128xf32>
    %c56 = arith.constant 56 : index
    %c0_20 = arith.constant 0 : index
    %42 = vector.load %arg6[%c56, %c0_20] : memref<64x128xf32, #tpu.memory_space<vmem>>, vector<8x128xf32>
    %43 = arith.select %30, %41, %42 : vector<8x128xi1>, vector<8x128xf32>
    %44 = arith.truncf %39 : vector<8x32xf32> to vector<8x32xbf16>
    %cst_21 = arith.constant dense<0.000000e+00> : vector<8x128xf32>
    %45 = tpu.matmul %44, %38, %cst_21 {dimension_numbers = #tpu.dot_dimension_numbers<[1], [0], [0], [1], [0, 0, 1, 1], [], []>} : vector<8x32xbf16>, vector<32x128xbf16>, vector<8x128xf32> -> vector<8x128xf32>
    %46 = arith.addf %43, %45 : vector<8x128xf32>
    %47 = arith.mulf %46, %33 : vector<8x128xf32>
    %48 = math.tanh %47 : vector<8x128xf32>
    %49 = arith.mulf %48, %33 : vector<8x128xf32>
    %50 = arith.addf %49, %36 : vector<8x128xf32>
    %51 = vector.extract_strided_slice %50 {offsets = [0, 0], sizes = [8, 32], strides = [1, 1]} : vector<8x128xf32> to vector<8x32xf32>
    %52 = vector.extract_strided_slice %50 {offsets = [0, 32], sizes = [8, 32], strides = [1, 1]} : vector<8x128xf32> to vector<8x32xf32>
    %53 = vector.extract_strided_slice %50 {offsets = [0, 64], sizes = [8, 32], strides = [1, 1]} : vector<8x128xf32> to vector<8x32xf32>
    %54 = vector.extract_strided_slice %50 {offsets = [0, 96], sizes = [8, 32], strides = [1, 1]} : vector<8x128xf32> to vector<8x32xf32>
    %55 = arith.mulf %52, %40 : vector<8x32xf32>
    %56 = arith.mulf %51, %53 : vector<8x32xf32>
    %57 = arith.addf %55, %56 : vector<8x32xf32>
    %58 = math.tanh %57 : vector<8x32xf32>
    %59 = arith.mulf %54, %58 : vector<8x32xf32>
    %c8 = arith.constant 8 : index
    %c0_22 = arith.constant 0 : index
    %60 = vector.load %arg6[%c8, %c0_22] : memref<64x128xf32, #tpu.memory_space<vmem>>, vector<8x128xf32>
    %c48 = arith.constant 48 : index
    %c0_23 = arith.constant 0 : index
    %61 = vector.load %arg6[%c48, %c0_23] : memref<64x128xf32, #tpu.memory_space<vmem>>, vector<8x128xf32>
    %62 = arith.select %30, %60, %61 : vector<8x128xi1>, vector<8x128xf32>
    %63 = arith.truncf %59 : vector<8x32xf32> to vector<8x32xbf16>
    %cst_24 = arith.constant dense<0.000000e+00> : vector<8x128xf32>
    %64 = tpu.matmul %63, %38, %cst_24 {dimension_numbers = #tpu.dot_dimension_numbers<[1], [0], [0], [1], [0, 0, 1, 1], [], []>} : vector<8x32xbf16>, vector<32x128xbf16>, vector<8x128xf32> -> vector<8x128xf32>
    %65 = arith.addf %62, %64 : vector<8x128xf32>
    %66 = arith.mulf %65, %33 : vector<8x128xf32>
    %67 = math.tanh %66 : vector<8x128xf32>
    %68 = arith.mulf %67, %33 : vector<8x128xf32>
    %69 = arith.addf %68, %36 : vector<8x128xf32>
    %70 = vector.extract_strided_slice %69 {offsets = [0, 0], sizes = [8, 32], strides = [1, 1]} : vector<8x128xf32> to vector<8x32xf32>
    %71 = vector.extract_strided_slice %69 {offsets = [0, 32], sizes = [8, 32], strides = [1, 1]} : vector<8x128xf32> to vector<8x32xf32>
    %72 = vector.extract_strided_slice %69 {offsets = [0, 64], sizes = [8, 32], strides = [1, 1]} : vector<8x128xf32> to vector<8x32xf32>
    %73 = vector.extract_strided_slice %69 {offsets = [0, 96], sizes = [8, 32], strides = [1, 1]} : vector<8x128xf32> to vector<8x32xf32>
    %74 = arith.mulf %71, %57 : vector<8x32xf32>
    %75 = arith.mulf %70, %72 : vector<8x32xf32>
    %76 = arith.addf %74, %75 : vector<8x32xf32>
    %77 = math.tanh %76 : vector<8x32xf32>
    %78 = arith.mulf %73, %77 : vector<8x32xf32>
    %c16 = arith.constant 16 : index
    %c0_25 = arith.constant 0 : index
    %79 = vector.load %arg6[%c16, %c0_25] : memref<64x128xf32, #tpu.memory_space<vmem>>, vector<8x128xf32>
    %c40 = arith.constant 40 : index
    %c0_26 = arith.constant 0 : index
    %80 = vector.load %arg6[%c40, %c0_26] : memref<64x128xf32, #tpu.memory_space<vmem>>, vector<8x128xf32>
    %81 = arith.select %30, %79, %80 : vector<8x128xi1>, vector<8x128xf32>
    %82 = arith.truncf %78 : vector<8x32xf32> to vector<8x32xbf16>
    %cst_27 = arith.constant dense<0.000000e+00> : vector<8x128xf32>
    %83 = tpu.matmul %82, %38, %cst_27 {dimension_numbers = #tpu.dot_dimension_numbers<[1], [0], [0], [1], [0, 0, 1, 1], [], []>} : vector<8x32xbf16>, vector<32x128xbf16>, vector<8x128xf32> -> vector<8x128xf32>
    %84 = arith.addf %81, %83 : vector<8x128xf32>
    %85 = arith.mulf %84, %33 : vector<8x128xf32>
    %86 = math.tanh %85 : vector<8x128xf32>
    %87 = arith.mulf %86, %33 : vector<8x128xf32>
    %88 = arith.addf %87, %36 : vector<8x128xf32>
    %89 = vector.extract_strided_slice %88 {offsets = [0, 0], sizes = [8, 32], strides = [1, 1]} : vector<8x128xf32> to vector<8x32xf32>
    %90 = vector.extract_strided_slice %88 {offsets = [0, 32], sizes = [8, 32], strides = [1, 1]} : vector<8x128xf32> to vector<8x32xf32>
    %91 = vector.extract_strided_slice %88 {offsets = [0, 64], sizes = [8, 32], strides = [1, 1]} : vector<8x128xf32> to vector<8x32xf32>
    %92 = vector.extract_strided_slice %88 {offsets = [0, 96], sizes = [8, 32], strides = [1, 1]} : vector<8x128xf32> to vector<8x32xf32>
    %93 = arith.mulf %90, %76 : vector<8x32xf32>
    %94 = arith.mulf %89, %91 : vector<8x32xf32>
    %95 = arith.addf %93, %94 : vector<8x32xf32>
    %96 = math.tanh %95 : vector<8x32xf32>
    %97 = arith.mulf %92, %96 : vector<8x32xf32>
    %c24 = arith.constant 24 : index
    %c0_28 = arith.constant 0 : index
    %98 = vector.load %arg6[%c24, %c0_28] : memref<64x128xf32, #tpu.memory_space<vmem>>, vector<8x128xf32>
    %c32 = arith.constant 32 : index
    %c0_29 = arith.constant 0 : index
    %99 = vector.load %arg6[%c32, %c0_29] : memref<64x128xf32, #tpu.memory_space<vmem>>, vector<8x128xf32>
    %100 = arith.select %30, %98, %99 : vector<8x128xi1>, vector<8x128xf32>
    %101 = arith.truncf %97 : vector<8x32xf32> to vector<8x32xbf16>
    %cst_30 = arith.constant dense<0.000000e+00> : vector<8x128xf32>
    %102 = tpu.matmul %101, %38, %cst_30 {dimension_numbers = #tpu.dot_dimension_numbers<[1], [0], [0], [1], [0, 0, 1, 1], [], []>} : vector<8x32xbf16>, vector<32x128xbf16>, vector<8x128xf32> -> vector<8x128xf32>
    %103 = arith.addf %100, %102 : vector<8x128xf32>
    %104 = arith.mulf %103, %33 : vector<8x128xf32>
    %105 = math.tanh %104 : vector<8x128xf32>
    %106 = arith.mulf %105, %33 : vector<8x128xf32>
    %107 = arith.addf %106, %36 : vector<8x128xf32>
    %108 = vector.extract_strided_slice %107 {offsets = [0, 0], sizes = [8, 32], strides = [1, 1]} : vector<8x128xf32> to vector<8x32xf32>
    %109 = vector.extract_strided_slice %107 {offsets = [0, 32], sizes = [8, 32], strides = [1, 1]} : vector<8x128xf32> to vector<8x32xf32>
    %110 = vector.extract_strided_slice %107 {offsets = [0, 64], sizes = [8, 32], strides = [1, 1]} : vector<8x128xf32> to vector<8x32xf32>
    %111 = vector.extract_strided_slice %107 {offsets = [0, 96], sizes = [8, 32], strides = [1, 1]} : vector<8x128xf32> to vector<8x32xf32>
    %112 = arith.mulf %109, %95 : vector<8x32xf32>
    %113 = arith.mulf %108, %110 : vector<8x32xf32>
    %114 = arith.addf %112, %113 : vector<8x32xf32>
    %115 = math.tanh %114 : vector<8x32xf32>
    %116 = arith.mulf %111, %115 : vector<8x32xf32>
    %c32_31 = arith.constant 32 : index
    %c0_32 = arith.constant 0 : index
    %117 = vector.load %arg6[%c32_31, %c0_32] : memref<64x128xf32, #tpu.memory_space<vmem>>, vector<8x128xf32>
    %c24_33 = arith.constant 24 : index
    %c0_34 = arith.constant 0 : index
    %118 = vector.load %arg6[%c24_33, %c0_34] : memref<64x128xf32, #tpu.memory_space<vmem>>, vector<8x128xf32>
    %119 = arith.select %30, %117, %118 : vector<8x128xi1>, vector<8x128xf32>
    %120 = arith.truncf %116 : vector<8x32xf32> to vector<8x32xbf16>
    %cst_35 = arith.constant dense<0.000000e+00> : vector<8x128xf32>
    %121 = tpu.matmul %120, %38, %cst_35 {dimension_numbers = #tpu.dot_dimension_numbers<[1], [0], [0], [1], [0, 0, 1, 1], [], []>} : vector<8x32xbf16>, vector<32x128xbf16>, vector<8x128xf32> -> vector<8x128xf32>
    %122 = arith.addf %119, %121 : vector<8x128xf32>
    %123 = arith.mulf %122, %33 : vector<8x128xf32>
    %124 = math.tanh %123 : vector<8x128xf32>
    %125 = arith.mulf %124, %33 : vector<8x128xf32>
    %126 = arith.addf %125, %36 : vector<8x128xf32>
    %127 = vector.extract_strided_slice %126 {offsets = [0, 0], sizes = [8, 32], strides = [1, 1]} : vector<8x128xf32> to vector<8x32xf32>
    %128 = vector.extract_strided_slice %126 {offsets = [0, 32], sizes = [8, 32], strides = [1, 1]} : vector<8x128xf32> to vector<8x32xf32>
    %129 = vector.extract_strided_slice %126 {offsets = [0, 64], sizes = [8, 32], strides = [1, 1]} : vector<8x128xf32> to vector<8x32xf32>
    %130 = vector.extract_strided_slice %126 {offsets = [0, 96], sizes = [8, 32], strides = [1, 1]} : vector<8x128xf32> to vector<8x32xf32>
    %131 = arith.mulf %128, %114 : vector<8x32xf32>
    %132 = arith.mulf %127, %129 : vector<8x32xf32>
    %133 = arith.addf %131, %132 : vector<8x32xf32>
    %134 = math.tanh %133 : vector<8x32xf32>
    %135 = arith.mulf %130, %134 : vector<8x32xf32>
    %c40_36 = arith.constant 40 : index
    %c0_37 = arith.constant 0 : index
    %136 = vector.load %arg6[%c40_36, %c0_37] : memref<64x128xf32, #tpu.memory_space<vmem>>, vector<8x128xf32>
    %c16_38 = arith.constant 16 : index
    %c0_39 = arith.constant 0 : index
    %137 = vector.load %arg6[%c16_38, %c0_39] : memref<64x128xf32, #tpu.memory_space<vmem>>, vector<8x128xf32>
    %138 = arith.select %30, %136, %137 : vector<8x128xi1>, vector<8x128xf32>
    %139 = arith.truncf %135 : vector<8x32xf32> to vector<8x32xbf16>
    %cst_40 = arith.constant dense<0.000000e+00> : vector<8x128xf32>
    %140 = tpu.matmul %139, %38, %cst_40 {dimension_numbers = #tpu.dot_dimension_numbers<[1], [0], [0], [1], [0, 0, 1, 1], [], []>} : vector<8x32xbf16>, vector<32x128xbf16>, vector<8x128xf32> -> vector<8x128xf32>
    %141 = arith.addf %138, %140 : vector<8x128xf32>
    %142 = arith.mulf %141, %33 : vector<8x128xf32>
    %143 = math.tanh %142 : vector<8x128xf32>
    %144 = arith.mulf %143, %33 : vector<8x128xf32>
    %145 = arith.addf %144, %36 : vector<8x128xf32>
    %146 = vector.extract_strided_slice %145 {offsets = [0, 0], sizes = [8, 32], strides = [1, 1]} : vector<8x128xf32> to vector<8x32xf32>
    %147 = vector.extract_strided_slice %145 {offsets = [0, 32], sizes = [8, 32], strides = [1, 1]} : vector<8x128xf32> to vector<8x32xf32>
    %148 = vector.extract_strided_slice %145 {offsets = [0, 64], sizes = [8, 32], strides = [1, 1]} : vector<8x128xf32> to vector<8x32xf32>
    %149 = vector.extract_strided_slice %145 {offsets = [0, 96], sizes = [8, 32], strides = [1, 1]} : vector<8x128xf32> to vector<8x32xf32>
    %150 = arith.mulf %147, %133 : vector<8x32xf32>
    %151 = arith.mulf %146, %148 : vector<8x32xf32>
    %152 = arith.addf %150, %151 : vector<8x32xf32>
    %153 = math.tanh %152 : vector<8x32xf32>
    %154 = arith.mulf %149, %153 : vector<8x32xf32>
    %c48_41 = arith.constant 48 : index
    %c0_42 = arith.constant 0 : index
    %155 = vector.load %arg6[%c48_41, %c0_42] : memref<64x128xf32, #tpu.memory_space<vmem>>, vector<8x128xf32>
    %c8_43 = arith.constant 8 : index
    %c0_44 = arith.constant 0 : index
    %156 = vector.load %arg6[%c8_43, %c0_44] : memref<64x128xf32, #tpu.memory_space<vmem>>, vector<8x128xf32>
    %157 = arith.select %30, %155, %156 : vector<8x128xi1>, vector<8x128xf32>
    %158 = arith.truncf %154 : vector<8x32xf32> to vector<8x32xbf16>
    %cst_45 = arith.constant dense<0.000000e+00> : vector<8x128xf32>
    %159 = tpu.matmul %158, %38, %cst_45 {dimension_numbers = #tpu.dot_dimension_numbers<[1], [0], [0], [1], [0, 0, 1, 1], [], []>} : vector<8x32xbf16>, vector<32x128xbf16>, vector<8x128xf32> -> vector<8x128xf32>
    %160 = arith.addf %157, %159 : vector<8x128xf32>
    %161 = arith.mulf %160, %33 : vector<8x128xf32>
    %162 = math.tanh %161 : vector<8x128xf32>
    %163 = arith.mulf %162, %33 : vector<8x128xf32>
    %164 = arith.addf %163, %36 : vector<8x128xf32>
    %165 = vector.extract_strided_slice %164 {offsets = [0, 0], sizes = [8, 32], strides = [1, 1]} : vector<8x128xf32> to vector<8x32xf32>
    %166 = vector.extract_strided_slice %164 {offsets = [0, 32], sizes = [8, 32], strides = [1, 1]} : vector<8x128xf32> to vector<8x32xf32>
    %167 = vector.extract_strided_slice %164 {offsets = [0, 64], sizes = [8, 32], strides = [1, 1]} : vector<8x128xf32> to vector<8x32xf32>
    %168 = vector.extract_strided_slice %164 {offsets = [0, 96], sizes = [8, 32], strides = [1, 1]} : vector<8x128xf32> to vector<8x32xf32>
    %169 = arith.mulf %166, %152 : vector<8x32xf32>
    %170 = arith.mulf %165, %167 : vector<8x32xf32>
    %171 = arith.addf %169, %170 : vector<8x32xf32>
    %172 = math.tanh %171 : vector<8x32xf32>
    %173 = arith.mulf %168, %172 : vector<8x32xf32>
    %c56_46 = arith.constant 56 : index
    %c0_47 = arith.constant 0 : index
    %174 = vector.load %arg6[%c56_46, %c0_47] : memref<64x128xf32, #tpu.memory_space<vmem>>, vector<8x128xf32>
    %c0_48 = arith.constant 0 : index
    %c0_49 = arith.constant 0 : index
    %175 = vector.load %arg6[%c0_48, %c0_49] : memref<64x128xf32, #tpu.memory_space<vmem>>, vector<8x128xf32>
    %176 = arith.select %30, %174, %175 : vector<8x128xi1>, vector<8x128xf32>
    %177 = arith.truncf %173 : vector<8x32xf32> to vector<8x32xbf16>
    %cst_50 = arith.constant dense<0.000000e+00> : vector<8x128xf32>
    %178 = tpu.matmul %177, %38, %cst_50 {dimension_numbers = #tpu.dot_dimension_numbers<[1], [0], [0], [1], [0, 0, 1, 1], [], []>} : vector<8x32xbf16>, vector<32x128xbf16>, vector<8x128xf32> -> vector<8x128xf32>
    %179 = arith.addf %176, %178 : vector<8x128xf32>
    %180 = arith.mulf %179, %33 : vector<8x128xf32>
    %181 = math.tanh %180 : vector<8x128xf32>
    %182 = arith.mulf %181, %33 : vector<8x128xf32>
    %183 = arith.addf %182, %36 : vector<8x128xf32>
    %184 = vector.extract_strided_slice %183 {offsets = [0, 0], sizes = [8, 32], strides = [1, 1]} : vector<8x128xf32> to vector<8x32xf32>
    %185 = vector.extract_strided_slice %183 {offsets = [0, 32], sizes = [8, 32], strides = [1, 1]} : vector<8x128xf32> to vector<8x32xf32>
    %186 = vector.extract_strided_slice %183 {offsets = [0, 64], sizes = [8, 32], strides = [1, 1]} : vector<8x128xf32> to vector<8x32xf32>
    %187 = vector.extract_strided_slice %183 {offsets = [0, 96], sizes = [8, 32], strides = [1, 1]} : vector<8x128xf32> to vector<8x32xf32>
    %188 = arith.mulf %185, %171 : vector<8x32xf32>
    %189 = arith.mulf %184, %186 : vector<8x32xf32>
    %190 = arith.addf %188, %189 : vector<8x32xf32>
    %191 = math.tanh %190 : vector<8x32xf32>
    %192 = arith.mulf %187, %191 : vector<8x32xf32>
    %193 = vector.extract_strided_slice %59 {offsets = [0, 0], sizes = [8, 16], strides = [1, 1]} : vector<8x32xf32> to vector<8x16xf32>
    %194 = vector.extract_strided_slice %192 {offsets = [0, 16], sizes = [8, 16], strides = [1, 1]} : vector<8x32xf32> to vector<8x16xf32>
    %195 = tpu.concatenate %193, %194 in 1 : vector<8x16xf32>, vector<8x16xf32> -> vector<8x32xf32>
    %196 = arith.mulf %195, %195 : vector<8x32xf32>
    %cst_51 = arith.constant dense<0.000000e+00> : vector<8xf32>
    %197 = vector.multi_reduction <add>, %196, %cst_51 [1] : vector<8x32xf32> to vector<8xf32>
    %198 = vector.shape_cast %197 : vector<8xf32> to vector<8x1xf32>
    %cst_52 = arith.constant 1.000000e-16 : f32
    %199 = vector.broadcast %cst_52 : f32 to vector<8x1xf32>
    %200 = arith.maximumf %198, %199 : vector<8x1xf32>
    %201 = math.rsqrt %200 : vector<8x1xf32>
    %202 = vector.broadcast %201 : vector<8x1xf32> to vector<8x32xf32>
    %203 = arith.mulf %195, %202 : vector<8x32xf32>
    %204 = vector.extract_strided_slice %78 {offsets = [0, 0], sizes = [8, 16], strides = [1, 1]} : vector<8x32xf32> to vector<8x16xf32>
    %205 = vector.extract_strided_slice %173 {offsets = [0, 16], sizes = [8, 16], strides = [1, 1]} : vector<8x32xf32> to vector<8x16xf32>
    %206 = tpu.concatenate %204, %205 in 1 : vector<8x16xf32>, vector<8x16xf32> -> vector<8x32xf32>
    %207 = arith.mulf %206, %206 : vector<8x32xf32>
    %cst_53 = arith.constant dense<0.000000e+00> : vector<8xf32>
    %208 = vector.multi_reduction <add>, %207, %cst_53 [1] : vector<8x32xf32> to vector<8xf32>
    %209 = vector.shape_cast %208 : vector<8xf32> to vector<8x1xf32>
    %cst_54 = arith.constant 1.000000e-16 : f32
    %210 = vector.broadcast %cst_54 : f32 to vector<8x1xf32>
    %211 = arith.maximumf %209, %210 : vector<8x1xf32>
    %212 = math.rsqrt %211 : vector<8x1xf32>
    %213 = vector.broadcast %212 : vector<8x1xf32> to vector<8x32xf32>
    %214 = arith.mulf %206, %213 : vector<8x32xf32>
    %215 = vector.extract_strided_slice %97 {offsets = [0, 0], sizes = [8, 16], strides = [1, 1]} : vector<8x32xf32> to vector<8x16xf32>
    %216 = vector.extract_strided_slice %154 {offsets = [0, 16], sizes = [8, 16], strides = [1, 1]} : vector<8x32xf32> to vector<8x16xf32>
    %217 = tpu.concatenate %215, %216 in 1 : vector<8x16xf32>, vector<8x16xf32> -> vector<8x32xf32>
    %218 = arith.mulf %217, %217 : vector<8x32xf32>
    %cst_55 = arith.constant dense<0.000000e+00> : vector<8xf32>
    %219 = vector.multi_reduction <add>, %218, %cst_55 [1] : vector<8x32xf32> to vector<8xf32>
    %220 = vector.shape_cast %219 : vector<8xf32> to vector<8x1xf32>
    %cst_56 = arith.constant 1.000000e-16 : f32
    %221 = vector.broadcast %cst_56 : f32 to vector<8x1xf32>
    %222 = arith.maximumf %220, %221 : vector<8x1xf32>
    %223 = math.rsqrt %222 : vector<8x1xf32>
    %224 = vector.broadcast %223 : vector<8x1xf32> to vector<8x32xf32>
    %225 = arith.mulf %217, %224 : vector<8x32xf32>
    %226 = vector.extract_strided_slice %116 {offsets = [0, 0], sizes = [8, 16], strides = [1, 1]} : vector<8x32xf32> to vector<8x16xf32>
    %227 = vector.extract_strided_slice %135 {offsets = [0, 16], sizes = [8, 16], strides = [1, 1]} : vector<8x32xf32> to vector<8x16xf32>
    %228 = tpu.concatenate %226, %227 in 1 : vector<8x16xf32>, vector<8x16xf32> -> vector<8x32xf32>
    %229 = arith.mulf %228, %228 : vector<8x32xf32>
    %cst_57 = arith.constant dense<0.000000e+00> : vector<8xf32>
    %230 = vector.multi_reduction <add>, %229, %cst_57 [1] : vector<8x32xf32> to vector<8xf32>
    %231 = vector.shape_cast %230 : vector<8xf32> to vector<8x1xf32>
    %cst_58 = arith.constant 1.000000e-16 : f32
    %232 = vector.broadcast %cst_58 : f32 to vector<8x1xf32>
    %233 = arith.maximumf %231, %232 : vector<8x1xf32>
    %234 = math.rsqrt %233 : vector<8x1xf32>
    %235 = vector.broadcast %234 : vector<8x1xf32> to vector<8x32xf32>
    %236 = arith.mulf %228, %235 : vector<8x32xf32>
    %237 = vector.extract_strided_slice %135 {offsets = [0, 0], sizes = [8, 16], strides = [1, 1]} : vector<8x32xf32> to vector<8x16xf32>
    %238 = vector.extract_strided_slice %116 {offsets = [0, 16], sizes = [8, 16], strides = [1, 1]} : vector<8x32xf32> to vector<8x16xf32>
    %239 = tpu.concatenate %237, %238 in 1 : vector<8x16xf32>, vector<8x16xf32> -> vector<8x32xf32>
    %240 = arith.mulf %239, %239 : vector<8x32xf32>
    %cst_59 = arith.constant dense<0.000000e+00> : vector<8xf32>
    %241 = vector.multi_reduction <add>, %240, %cst_59 [1] : vector<8x32xf32> to vector<8xf32>
    %242 = vector.shape_cast %241 : vector<8xf32> to vector<8x1xf32>
    %cst_60 = arith.constant 1.000000e-16 : f32
    %243 = vector.broadcast %cst_60 : f32 to vector<8x1xf32>
    %244 = arith.maximumf %242, %243 : vector<8x1xf32>
    %245 = math.rsqrt %244 : vector<8x1xf32>
    %246 = vector.broadcast %245 : vector<8x1xf32> to vector<8x32xf32>
    %247 = arith.mulf %239, %246 : vector<8x32xf32>
    %248 = vector.extract_strided_slice %154 {offsets = [0, 0], sizes = [8, 16], strides = [1, 1]} : vector<8x32xf32> to vector<8x16xf32>
    %249 = vector.extract_strided_slice %97 {offsets = [0, 16], sizes = [8, 16], strides = [1, 1]} : vector<8x32xf32> to vector<8x16xf32>
    %250 = tpu.concatenate %248, %249 in 1 : vector<8x16xf32>, vector<8x16xf32> -> vector<8x32xf32>
    %251 = arith.mulf %250, %250 : vector<8x32xf32>
    %cst_61 = arith.constant dense<0.000000e+00> : vector<8xf32>
    %252 = vector.multi_reduction <add>, %251, %cst_61 [1] : vector<8x32xf32> to vector<8xf32>
    %253 = vector.shape_cast %252 : vector<8xf32> to vector<8x1xf32>
    %cst_62 = arith.constant 1.000000e-16 : f32
    %254 = vector.broadcast %cst_62 : f32 to vector<8x1xf32>
    %255 = arith.maximumf %253, %254 : vector<8x1xf32>
    %256 = math.rsqrt %255 : vector<8x1xf32>
    %257 = vector.broadcast %256 : vector<8x1xf32> to vector<8x32xf32>
    %258 = arith.mulf %250, %257 : vector<8x32xf32>
    %259 = vector.extract_strided_slice %173 {offsets = [0, 0], sizes = [8, 16], strides = [1, 1]} : vector<8x32xf32> to vector<8x16xf32>
    %260 = vector.extract_strided_slice %78 {offsets = [0, 16], sizes = [8, 16], strides = [1, 1]} : vector<8x32xf32> to vector<8x16xf32>
    %261 = tpu.concatenate %259, %260 in 1 : vector<8x16xf32>, vector<8x16xf32> -> vector<8x32xf32>
    %262 = arith.mulf %261, %261 : vector<8x32xf32>
    %cst_63 = arith.constant dense<0.000000e+00> : vector<8xf32>
    %263 = vector.multi_reduction <add>, %262, %cst_63 [1] : vector<8x32xf32> to vector<8xf32>
    %264 = vector.shape_cast %263 : vector<8xf32> to vector<8x1xf32>
    %cst_64 = arith.constant 1.000000e-16 : f32
    %265 = vector.broadcast %cst_64 : f32 to vector<8x1xf32>
    %266 = arith.maximumf %264, %265 : vector<8x1xf32>
    %267 = math.rsqrt %266 : vector<8x1xf32>
    %268 = vector.broadcast %267 : vector<8x1xf32> to vector<8x32xf32>
    %269 = arith.mulf %261, %268 : vector<8x32xf32>
    %270 = vector.extract_strided_slice %192 {offsets = [0, 0], sizes = [8, 16], strides = [1, 1]} : vector<8x32xf32> to vector<8x16xf32>
    %271 = vector.extract_strided_slice %59 {offsets = [0, 16], sizes = [8, 16], strides = [1, 1]} : vector<8x32xf32> to vector<8x16xf32>
    %272 = tpu.concatenate %270, %271 in 1 : vector<8x16xf32>, vector<8x16xf32> -> vector<8x32xf32>
    %273 = arith.mulf %272, %272 : vector<8x32xf32>
    %cst_65 = arith.constant dense<0.000000e+00> : vector<8xf32>
    %274 = vector.multi_reduction <add>, %273, %cst_65 [1] : vector<8x32xf32> to vector<8xf32>
    %275 = vector.shape_cast %274 : vector<8xf32> to vector<8x1xf32>
    %cst_66 = arith.constant 1.000000e-16 : f32
    %276 = vector.broadcast %cst_66 : f32 to vector<8x1xf32>
    %277 = arith.maximumf %275, %276 : vector<8x1xf32>
    %278 = math.rsqrt %277 : vector<8x1xf32>
    %279 = vector.broadcast %278 : vector<8x1xf32> to vector<8x32xf32>
    %280 = arith.mulf %272, %279 : vector<8x32xf32>
    %281 = tpu.concatenate %203, %214, %225, %236, %247, %258, %269, %280 in 1 : vector<8x32xf32>, vector<8x32xf32>, vector<8x32xf32>, vector<8x32xf32>, vector<8x32xf32>, vector<8x32xf32>, vector<8x32xf32>, vector<8x32xf32> -> vector<8x256xf32>
    %c0_67 = arith.constant 0 : index
    %c0_68 = arith.constant 0 : index
    %282 = vector.load %arg5[%c0_67, %c0_68] : memref<8x256xf32, #tpu.memory_space<vmem>>, vector<8x256xf32>
    tpu.vector_store %arg5[%c0_67, %c0_68], %281 {strides = array<i32>} : memref<8x256xf32, #tpu.memory_space<vmem>>, vector<8x256xf32>,
    return
  }
  func.func @transform_0(%arg0: i32) -> (i32, i32) {
    %c0_i32 = arith.constant 0 : i32
    %c0_i32_0 = arith.constant 0 : i32
    return %arg0, %c0_i32 : i32, i32
  }
  func.func @transform_1(%arg0: i32) -> (i32, i32) {
    %c0_i32 = arith.constant 0 : i32
    %c0_i32_0 = arith.constant 0 : i32
    %c0_i32_1 = arith.constant 0 : i32
    return %c0_i32, %c0_i32_0 : i32, i32
  }
  func.func @transform_2(%arg0: i32) -> (i32, i32) {
    %c0_i32 = arith.constant 0 : i32
    %c0_i32_0 = arith.constant 0 : i32
    %c0_i32_1 = arith.constant 0 : i32
    return %c0_i32, %c0_i32_0 : i32, i32
  }
  func.func @transform_3(%arg0: i32) -> (i32, i32) {
    %c0_i32 = arith.constant 0 : i32
    %c0_i32_0 = arith.constant 0 : i32
    %c0_i32_1 = arith.constant 0 : i32
    return %c0_i32, %c0_i32_0 : i32, i32
  }
  func.func @transform_4(%arg0: i32) -> (i32, i32) {
    %c0_i32 = arith.constant 0 : i32
    %c0_i32_0 = arith.constant 0 : i32
    return %arg0, %c0_i32 : i32, i32
  }
}

</mosaic_0001>

<bundles_post_ra>
// kernel: lstm_module_forward.1
= control target key start
LH: loop header
LB: loop body
LE: loop exit
PB: predicated region body
PF: predicated region fallthrough
CT: control target
= control target key end

     0   :  { %vm32_vm0 = vcmask 130048   ;;  %v758_v10 = vmov 0   ;;  %v106_v11 = vlaneseq  ;;  %v759_v21 = vmov 0.5   ;;  %s761_s5 = smov 32   ;;  %s1112_s1 = inlined_call_operand.vmem [shape: f32[16,128], index: 1, kind: input, shape index: {}]   ;;  %s1113_s2 = inlined_call_operand.vmem [shape: f32[32,128], index: 2, kind: input, shape index: {}]   ;;  %s1114_s0 = inlined_call_operand.vmem [shape: f32[64,16], index: 0, kind: input, shape index: {}]   ;;  %s1115_s3 = inlined_call_operand.vmem [shape: f32[1,128], index: 3, kind: input, shape index: {}]   ;;  %s1116_s4 = inlined_call_operand.vmem [shape: f32[8,256], index: 4, kind: output, shape index: {}]  }
   0x1   :  { %v27_v0 = vld [vmem:[%s1112_s1 + $0x8] sm:$0xff]  ;;  %v26_v1 = vld [vmem:[%s1112_s1] sm:$0xff]  ;;  %v128_v2 = vld [vmem:[%s1113_s2 + $0x10] sm:$0xff]  ;;  %vm135_vm5 = vcmask 261120  }
   0x2   :  { %702 = vmatpush.msra.mxu3 %v27_v0  ;;  %v129_v3 = vld [vmem:[%s1113_s2 + $0x18] sm:$0xff]  ;;  %71 = vmatpush.msra.mxu0 %v27_v0  ;;  %v126_v5 = vld [vmem:[%s1113_s2] sm:$0xff]  ;;  %v127_v7 = vld [vmem:[%s1113_s2 + $0x8] sm:$0xff]  ;;  %v107_v12 = vand.u32 127, %v106_v11 }
   0x3   :  { %v25_v4 = vld [vmem:[%s1114_s0 + $0x38] sm:$0xff]  ;;  %v806_v6 = vpack.c.bf16 %v129_v3, %v128_v2  ;;  %v18_v8 = vld [vmem:[%s1114_s0] sm:$0xff]  ;;  %v816_v9 = vpack.c.bf16 %v127_v7, %v126_v5  ;;  %v19_v38 = vld [vmem:[%s1114_s0 + $0x8] sm:$0xff] }
   0x4   :  { %703 = vmatpush.msra.mxu3 %v26_v1  ;;  %72 = vmatpush.msra.mxu0 %v26_v1  ;;  %v835_v13 = vld [vmem:[%s1115_s3] ss:$0 sm:$0xff]  ;;  %v115_v15 = vand.u32 31, %v107_v12  ;;  %vm108_vm1 = vcmp.ge.s32.totalorder %v107_v12, 64  ;;  %vm109_vm2 = vcmp.lt.s32.totalorder %v107_v12, 96  ;;  %s760_s3 = smov 64  }
   0x5   :  { %145 = vmatpush.bf16.msra.mxu1 %v806_v6  ;;  %694 = vmatmul.msk.f32.vlgmr.msra.gmra.mxu3 %vm32_vm0, %v25_v4  ;;  %vm110_vm3 = vmand %vm108_vm1, %vm109_vm2  ;;  %v20_v39 = vld [vmem:[%s1114_s0 + $0x10] sm:$0xff]  ;;  %v21_v40 = vld [vmem:[%s1114_s0 + $0x18] sm:$0xff] }
   0x6   :  { %687 = vmatmul.msk.f32.vlgmr.msra.gmra.mxu0 %vm32_vm0, %v18_v8  ;;  %190 = vmatpush.bf16.msra.mxu2 %v806_v6  ;;  %vm840_vm4 = vcmp.lt.s32.totalorder %v115_v15, 16  ;;  %v847_v22 = vsel %vm110_vm3, 1.0, %v759_v21  ;;  %v858_v29 = vsel %vm110_vm3, 0.0, %v759_v21  ;;  %v22_v41 = vld [vmem:[%s1114_s0 + $0x20] sm:$0xff]  ;;  %v23_v45 = vld [vmem:[%s1114_s0 + $0x28] sm:$0xff]  ;;  %v24_v46 = vld [vmem:[%s1114_s0 + $0x30] sm:$0xff] }
   0x7   :  { %235 = vmatpush.bf16.msrb.mxu3 %v806_v6  ;;  %s762_s0 = smov 96  }
   0x9   :  { %146 = vmatpush.bf16.msra.mxu1 %v816_v9 }
   0xa   :  { %191 = vmatpush.bf16.msra.mxu2 %v816_v9 }
   0xb   :  { %236 = vmatpush.bf16.msrb.mxu3 %v816_v9 }
   0xc   :  { %147 = vmatmul.bf16.vlgmr.msra.gmra.mxu1 %v758_v10 }
   0xd   :  { %280 = vmatpush.bf16.msrb.mxu1 %v806_v6 }
   0xe   :  { %323 = vmatpush.bf16.msrb.mxu2 %v806_v6  ;;  %688 = vmatmul.msk.f32.gmra.mxu0 %vm32_vm0, %v19_v38 }
   0xf   :  { %366 = vmatpush.bf16.msra.mxu3 %v806_v6 }
  0x11   :  { %281 = vmatpush.bf16.msrb.mxu1 %v816_v9 }
  0x12   :  { %324 = vmatpush.bf16.msrb.mxu2 %v816_v9 }
  0x13   :  { %367 = vmatpush.bf16.msra.mxu3 %v816_v9 }
  0x15   :  { %409 = vmatpush.bf16.msra.mxu1 %v806_v6 }
  0x16   :  { %689 = vmatmul.msk.f32.gmra.mxu0 %vm32_vm0, %v20_v39 }
  0x19   :  { %410 = vmatpush.bf16.msra.mxu1 %v816_v9 }
  0x1e   :  { %690 = vmatmul.msk.f32.gmra.mxu0 %vm32_vm0, %v21_v40 }
  0x26   :  { %691 = vmatmul.msk.f32.gmra.mxu0 %vm32_vm0, %v22_v41 }
  0x2e   :  { %692 = vmatmul.msk.f32.gmra.mxu0 %vm32_vm0, %v23_v45 }
  0x36   :  { %693 = vmatmul.msk.f32.gmra.mxu0 %vm32_vm0, %v24_v46 }
  0x83   :  { %v74_v14 = vpop.f32.mrf.mxu0 }
  0x84   :  { %v838_v16 = vadd.f32 %v835_v13, %v74_v14 }
  0x88   :  { %v95_v17 = vpop.f32.mrf.mxu3 }
  0x89   :  { %v845_v19 = vadd.f32 %v835_v13, %v95_v17  ;;  %v148_v20 = vpop.f32.mrf.mxu1 }
  0x8b   :  { %v134_v23 = vsel %vm840_vm4, %v838_v16, %v845_v19  ;;  %v438_v24 = vsel %vm840_vm4, %v845_v19, %v838_v16  ;;  %v77_v48 = vpop.f32.mrf.mxu0 }
  0x8c   :  { %v152_v25 = vadd.f32 %v148_v20, %v134_v23  ;;  %v898_v54 = vadd.f32 %v835_v13, %v77_v48 }
  0x8e   :  { %v153_v26 = vmul.f32 %v152_v25, %v847_v22 }
  0x90   :  { %710 = vtanh.f32 %v153_v26 }
  0x91   :  { %v150_v27 = vpop.f32.mrf.mxu1 }
  0x93   :  { %v80_v49 = vpop.f32.mrf.mxu0 }
  0x94   :  { %v908_v57 = vadd.f32 %v835_v13, %v80_v49 }
  0x96   :  { %v711_v28 = vpop.eup %710 }
  0x97   :  { %v155_v30 = vmul.f32 %v711_v28, %v847_v22 }
  0x99   :  { %v156_v31 = vadd.f32 %v155_v30, %v858_v29 }
  0x9b   :  { %159 = vrot.lane.b32.xlu0 %v156_v31, %s760_s3  ;;  %v157_v34 = vmul.f32 0.0, %v156_v31  ;;  %v83_v50 = vpop.f32.mrf.mxu0 }
  0x9c   :  { %v922_v61 = vadd.f32 %v835_v13, %v83_v50 }
  0xa3   :  { %v86_v51 = vpop.f32.mrf.mxu0 }
  0xa4   :  { %v925_v62 = vadd.f32 %v835_v13, %v86_v51 }
  0xa6   :  { %v266_v63 = vsel %vm840_vm4, %v922_v61, %v925_v62  ;;  %v309_v0 = vsel %vm840_vm4, %v925_v62, %v922_v61 }
  0xab   :  { %v89_v52 = vpop.f32.mrf.mxu0 }
  0xac   :  { %v911_v58 = vadd.f32 %v835_v13, %v89_v52 }
  0xae   :  { %v221_v59 = vsel %vm840_vm4, %v908_v57, %v911_v58  ;;  %v352_v60 = vsel %vm840_vm4, %v911_v58, %v908_v57 }
  0xb3   :  { %v92_v53 = vpop.f32.mrf.mxu0 }
  0xb4   :  { %v901_v55 = vadd.f32 %v835_v13, %v92_v53 }
  0xb6   :  { %v395_v56 = vsel %vm840_vm4, %v901_v55, %v898_v54  ;;  %v176_v1 = vsel %vm840_vm4, %v898_v54, %v901_v55 }
 0x10d   :  { %v160_v32 = vpop.permute.xlu0 %159 }
 0x10e   :  { %v162_v33 = vmul.f32 %v160_v32, %v156_v31 }
 0x110   :  { %164 = vrot.lane.b32.xlu0 %v162_v33, %s761_s5 }
 0x182   :  { %v165_v35 = vpop.permute.xlu0 %164 }
 0x183   :  { %v167_v36 = vadd.f32 %v165_v35, %v157_v34 }
 0x185   :  { %712 = vtanh.f32 %v167_v36 }
 0x18b   :  { %v713_v37 = vpop.eup %712 }
 0x18c   :  { %170 = vrot.lane.b32.xlu1 %v713_v37, %s760_s3 }
 0x1fe   :  { %v171_v42 = vpop.permute.xlu1 %170 }
 0x1ff   :  { %v881_v43 = vmul.f32 %v171_v42, %v156_v31 }
 0x201   :  { %v177_v44 = vpack.c.bf16 %v881_v43, %v881_v43 }
 0x203   :  { %179 = vrot.lane.b32.xlu1 %v177_v44, %s761_s5 }
 0x275   :  { %v180_v47 = vpop.permute.xlu1 %179 }
 0x276   :  { %695 = vmatmul.msk.bf16.vlgmr.msra.gmra.mxu2 %vm135_vm5, %v180_v47 }
 0x277   :  { %452 = vmatpush.bf16.msra.mxu2 %v806_v6 }
 0x27b   :  { %453 = vmatpush.bf16.msra.mxu2 %v816_v9 }
 0x2f9   :  { %v193_v2 = vpop.f32.mrf.mxu2 }
 0x2fa   :  { %v197_v3 = vadd.f32 %v193_v2, %v176_v1 }
 0x2fc   :  { %v198_v4 = vmul.f32 %v197_v3, %v847_v22 }
 0x2fe   :  { %714 = vtanh.f32 %v198_v4 }
 0x301   :  { %v195_v5 = vpop.f32.mrf.mxu2 }
 0x304   :  { %v715_v6 = vpop.eup %714 }
 0x305   :  { %v200_v7 = vmul.f32 %v715_v6, %v847_v22 }
 0x307   :  { %v201_v8 = vadd.f32 %v200_v7, %v858_v29 }
 0x309   :  { %204 = vrot.lane.b32.xlu2 %v201_v8, %s760_s3  ;;  %v202_v11 = vmul.f32 %v201_v8, %v167_v36 }
 0x363   :  { %v205_v9 = vpop.permute.xlu2 %204 }
 0x364   :  { %v207_v10 = vmul.f32 %v205_v9, %v201_v8 }
 0x366   :  { %209 = vrot.lane.b32.xlu2 %v207_v10, %s761_s5 }
 0x3c0   :  { %v210_v12 = vpop.permute.xlu2 %209 }
 0x3c1   :  { %v212_v13 = vadd.f32 %v210_v12, %v202_v11 }
 0x3c3   :  { %716 = vtanh.f32 %v212_v13 }
 0x3c9   :  { %v717_v14 = vpop.eup %716 }
 0x3ca   :  { %215 = vrot.lane.b32.xlu0 %v717_v14, %s760_s3 }
 0x43c   :  { %v216_v15 = vpop.permute.xlu0 %215 }
 0x43d   :  { %v945_v17 = vmul.f32 %v216_v15, %v201_v8 }
 0x43f   :  { %v222_v20 = vpack.c.bf16 %v945_v17, %v945_v17 }
 0x441   :  { %224 = vrot.lane.b32.xlu1 %v222_v20, %s761_s5 }
 0x4b3   :  { %v225_v21 = vpop.permute.xlu1 %224 }
 0x4b4   :  { %696 = vmatmul.msk.bf16.vlgmr.msrb.gmra.mxu3 %vm135_vm5, %v225_v21 }
 0x537   :  { %v238_v23 = vpop.f32.mrf.mxu3 }
 0x538   :  { %v242_v25 = vadd.f32 %v238_v23, %v221_v59 }
 0x53a   :  { %v243_v26 = vmul.f32 %v242_v25, %v847_v22 }
 0x53c   :  { %718 = vtanh.f32 %v243_v26 }
 0x53f   :  { %v240_v27 = vpop.f32.mrf.mxu3 }
 0x542   :  { %v719_v28 = vpop.eup %718 }
 0x543   :  { %v245_v30 = vmul.f32 %v719_v28, %v847_v22 }
 0x545   :  { %v246_v31 = vadd.f32 %v245_v30, %v858_v29 }
 0x547   :  { %249 = vrot.lane.b32.xlu2 %v246_v31, %s760_s3  ;;  %v247_v34 = vmul.f32 %v246_v31, %v212_v13 }
 0x5a1   :  { %v250_v32 = vpop.permute.xlu2 %249 }
 0x5a2   :  { %v252_v33 = vmul.f32 %v250_v32, %v246_v31 }
 0x5a4   :  { %254 = vrot.lane.b32.xlu0 %v252_v33, %s761_s5 }
 0x616   :  { %v255_v35 = vpop.permute.xlu0 %254 }
 0x617   :  { %v257_v36 = vadd.f32 %v255_v35, %v247_v34 }
 0x619   :  { %720 = vtanh.f32 %v257_v36 }
 0x61f   :  { %v721_v37 = vpop.eup %720 }
 0x620   :  { %260 = vrot.lane.b32.xlu1 %v721_v37, %s760_s3 }
 0x692   :  { %v261_v38 = vpop.permute.xlu1 %260 }
 0x693   :  { %v957_v39 = vmul.f32 %v261_v38, %v246_v31 }
 0x695   :  { %v267_v40 = vpack.c.bf16 %v957_v39, %v957_v39 }
 0x697   :  { %269 = vrot.lane.b32.xlu2 %v267_v40, %s761_s5 }
 0x6f1   :  { %v270_v41 = vpop.permute.xlu2 %269 }
 0x6f2   :  { %697 = vmatmul.msk.bf16.vlgmr.msrb.gmra.mxu1 %vm135_vm5, %v270_v41 }
 0x76f   :  { %v283_v42 = vpop.f32.mrf.mxu1 }
 0x770   :  { %v287_v44 = vadd.f32 %v283_v42, %v266_v63 }
 0x772   :  { %v288_v45 = vmul.f32 %v287_v44, %v847_v22 }
 0x774   :  { %722 = vtanh.f32 %v288_v45 }
 0x777   :  { %v285_v46 = vpop.f32.mrf.mxu1 }
 0x77a   :  { %v723_v47 = vpop.eup %722 }
 0x77b   :  { %v290_v48 = vmul.f32 %v723_v47, %v847_v22 }
 0x77d   :  { %v291_v49 = vadd.f32 %v290_v48, %v858_v29 }
 0x77f   :  { %294 = vrot.lane.b32.xlu0 %v291_v49, %s760_s3  ;;  %v292_v52 = vmul.f32 %v291_v49, %v257_v36 }
 0x7f1   :  { %v295_v50 = vpop.permute.xlu0 %294 }
 0x7f2   :  { %v297_v51 = vmul.f32 %v295_v50, %v291_v49 }
 0x7f4   :  { %299 = vrot.lane.b32.xlu1 %v297_v51, %s761_s5 }
 0x866   :  { %v300_v53 = vpop.permute.xlu1 %299 }
 0x867   :  { %v302_v59 = vadd.f32 %v300_v53, %v292_v52 }
 0x869   :  { %724 = vtanh.f32 %v302_v59 }
 0x86f   :  { %v725_v63 = vpop.eup %724 }
 0x870   :  { %305 = vrot.lane.b32.xlu2 %v725_v63, %s760_s3 }
 0x8ca   :  { %v306_v1 = vpop.permute.xlu2 %305 }
 0x8cb   :  { %v969_v2 = vmul.f32 %v306_v1, %v291_v49 }
 0x8cd   :  { %v310_v3 = vpack.c.bf16 %v969_v2, %v969_v2 }
 0x8cf   :  { %312 = vrot.lane.b32.xlu0 %v310_v3, %s761_s5 }
 0x941   :  { %v313_v4 = vpop.permute.xlu0 %312 }
 0x942   :  { %698 = vmatmul.msk.bf16.vlgmr.msrb.gmra.mxu2 %vm135_vm5, %v313_v4 }
 0x9c5   :  { %v326_v5 = vpop.f32.mrf.mxu2 }
 0x9c6   :  { %v330_v6 = vadd.f32 %v326_v5, %v309_v0 }
 0x9c8   :  { %v331_v7 = vmul.f32 %v330_v6, %v847_v22 }
 0x9ca   :  { %726 = vtanh.f32 %v331_v7 }
 0x9cd   :  { %v328_v8 = vpop.f32.mrf.mxu2 }
 0x9d0   :  { %v727_v9 = vpop.eup %726 }
 0x9d1   :  { %v333_v10 = vmul.f32 %v727_v9, %v847_v22 }
 0x9d3   :  { %v334_v11 = vadd.f32 %v333_v10, %v858_v29 }
 0x9d5   :  { %337 = vrot.lane.b32.xlu1 %v334_v11, %s760_s3  ;;  %v335_v14 = vmul.f32 %v334_v11, %v302_v59 }
 0xa47   :  { %v338_v12 = vpop.permute.xlu1 %337 }
 0xa48   :  { %v340_v13 = vmul.f32 %v338_v12, %v334_v11 }
 0xa4a   :  { %342 = vrot.lane.b32.xlu2 %v340_v13, %s761_s5 }
 0xaa4   :  { %v343_v15 = vpop.permute.xlu2 %342 }
 0xaa5   :  { %v345_v20 = vadd.f32 %v343_v15, %v335_v14 }
 0xaa7   :  { %728 = vtanh.f32 %v345_v20 }
 0xaad   :  { %v729_v61 = vpop.eup %728 }
 0xaae   :  { %348 = vrot.lane.b32.xlu0 %v729_v61, %s760_s3 }
 0xb20   :  { %v349_v62 = vpop.permute.xlu0 %348 }
 0xb21   :  { %v986_v0 = vmul.f32 %v349_v62, %v334_v11 }
 0xb23   :  { %v353_v21 = vpack.c.bf16 %v986_v0, %v986_v0 }
 0xb25   :  { %355 = vrot.lane.b32.xlu1 %v353_v21, %s761_s5 }
 0xb97   :  { %v356_v23 = vpop.permute.xlu1 %355 }
 0xb98   :  { %699 = vmatmul.msk.bf16.vlgmr.msra.gmra.mxu3 %vm135_vm5, %v356_v23 }
 0xc1b   :  { %v369_v25 = vpop.f32.mrf.mxu3 }
 0xc1c   :  { %v373_v26 = vadd.f32 %v369_v25, %v352_v60 }
 0xc1e   :  { %v374_v27 = vmul.f32 %v373_v26, %v847_v22 }
 0xc20   :  { %730 = vtanh.f32 %v374_v27 }
 0xc23   :  { %v371_v28 = vpop.f32.mrf.mxu3 }
 0xc26   :  { %v731_v30 = vpop.eup %730 }
 0xc27   :  { %v376_v31 = vmul.f32 %v731_v30, %v847_v22 }
 0xc29   :  { %v377_v32 = vadd.f32 %v376_v31, %v858_v29 }
 0xc2b   :  { %380 = vrot.lane.b32.xlu2 %v377_v32, %s760_s3  ;;  %v378_v35 = vmul.f32 %v377_v32, %v345_v20 }
 0xc85   :  { %v381_v33 = vpop.permute.xlu2 %380 }
 0xc86   :  { %v383_v34 = vmul.f32 %v381_v33, %v377_v32 }
 0xc88   :  { %385 = vrot.lane.b32.xlu0 %v383_v34, %s761_s5 }
 0xcfa   :  { %v386_v36 = vpop.permute.xlu0 %385 }
 0xcfb   :  { %v388_v37 = vadd.f32 %v386_v36, %v378_v35 }
 0xcfd   :  { %732 = vtanh.f32 %v388_v37 }
 0xd03   :  { %v733_v57 = vpop.eup %732 }
 0xd04   :  { %391 = vrot.lane.b32.xlu1 %v733_v57, %s760_s3 }
 0xd76   :  { %v392_v58 = vpop.permute.xlu1 %391 }
 0xd77   :  { %v394_v60 = vmul.f32 %v392_v58, %v377_v32 }
 0xd79   :  { %v396_v38 = vpack.c.bf16 %v394_v60, %v394_v60 }
 0xd7b   :  { %398 = vrot.lane.b32.xlu2 %v396_v38, %s761_s5 }
 0xdd5   :  { %v399_v40 = vpop.permute.xlu2 %398 }
 0xdd6   :  { %700 = vmatmul.msk.bf16.vlgmr.msra.gmra.mxu1 %vm135_vm5, %v399_v40 }
 0xe53   :  { %v412_v41 = vpop.f32.mrf.mxu1 }
 0xe54   :  { %v416_v42 = vadd.f32 %v412_v41, %v395_v56 }
 0xe56   :  { %v417_v44 = vmul.f32 %v416_v42, %v847_v22 }
 0xe58   :  { %734 = vtanh.f32 %v417_v44 }
 0xe5b   :  { %v414_v45 = vpop.f32.mrf.mxu1 }
 0xe5e   :  { %v735_v46 = vpop.eup %734 }
 0xe5f   :  { %v419_v47 = vmul.f32 %v735_v46, %v847_v22 }
 0xe61   :  { %v420_v48 = vadd.f32 %v419_v47, %v858_v29 }
 0xe63   :  { %423 = vrot.lane.b32.xlu0 %v420_v48, %s760_s3  ;;  %v421_v51 = vmul.f32 %v420_v48, %v388_v37 }
 0xed5   :  { %v424_v49 = vpop.permute.xlu0 %423 }
 0xed6   :  { %v426_v50 = vmul.f32 %v424_v49, %v420_v48 }
 0xed8   :  { %428 = vrot.lane.b32.xlu1 %v426_v50, %s761_s5 }
 0xf4a   :  { %v429_v52 = vpop.permute.xlu1 %428 }
 0xf4b   :  { %v431_v53 = vadd.f32 %v429_v52, %v421_v51 }
 0xf4d   :  { %736 = vtanh.f32 %v431_v53 }
 0xf53   :  { %v737_v54 = vpop.eup %736 }
 0xf54   :  { %434 = vrot.lane.b32.xlu2 %v737_v54, %s760_s3 }
 0xfae   :  { %v435_v55 = vpop.permute.xlu2 %434 }
 0xfaf   :  { %v437_v56 = vmul.f32 %v435_v55, %v420_v48 }
 0xfb1   :  { %v439_v59 = vpack.c.bf16 %v437_v56, %v437_v56 }
 0xfb3   :  { %441 = vrot.lane.b32.xlu0 %v439_v59, %s761_s5 }
0x1025   :  { %v442_v63 = vpop.permute.xlu0 %441 }
0x1026   :  { %701 = vmatmul.msk.bf16.vlgmr.msra.gmra.mxu2 %vm135_vm5, %v442_v63 }
0x10a9   :  { %v455_v1 = vpop.f32.mrf.mxu2 }
0x10aa   :  { %v459_v3 = vadd.f32 %v455_v1, %v438_v24 }
0x10ac   :  { %v460_v4 = vmul.f32 %v459_v3, %v847_v22 }
0x10ae   :  { %738 = vtanh.f32 %v460_v4 }
0x10b1   :  { %v457_v5 = vpop.f32.mrf.mxu2 }
0x10b4   :  { %v739_v6 = vpop.eup %738 }
0x10b5   :  { %v462_v7 = vmul.f32 %v739_v6, %v847_v22 }
0x10b7   :  { %v463_v8 = vadd.f32 %v462_v7, %v858_v29 }
0x10b9   :  { %466 = vrot.lane.b32.xlu1 %v463_v8, %s760_s3  ;;  %v464_v19 = vmul.f32 %v463_v8, %v431_v53 }
0x10c1   :  { %507 = vrot.lane.b32.xlu1 %v945_v17, %s761_s5 }
0x10c9   :  { %536 = vrot.lane.b32.xlu1 %v394_v60, %s761_s5 }
0x10d1   :  { %557 = vrot.lane.b32.xlu1 %v969_v2, %s761_s5 }
0x112b   :  { %v467_v16 = vpop.permute.xlu1 %466 }
0x112c   :  { %v469_v18 = vmul.f32 %v467_v16, %v463_v8 }
0x112e   :  { %471 = vrot.lane.b32.xlu2 %v469_v18, %s761_s5 }
0x1133   :  { %v508_v17 = vpop.permute.xlu1 %507 }
0x1136   :  { %511 = vrot.lane.b32.xlu2 %v437_v56, %s761_s5 }
0x113b   :  { %v537_v10 = vpop.permute.xlu1 %536 }
0x113e   :  { %482 = vrot.lane.b32.xlu2 %v881_v43, %s761_s5 }
0x1143   :  { %v558_v27 = vpop.permute.xlu1 %557 }
0x1146   :  { %561 = vrot.lane.b32.xlu2 %v986_v0, %s761_s5 }
0x1188   :  { %v472_v22 = vpop.permute.xlu2 %471 }
0x1189   :  { %v474_v24 = vadd.f32 %v472_v22, %v464_v19 }
0x118b   :  { %740 = vtanh.f32 %v474_v24 }
0x1190   :  { %v512_v13 = vpop.permute.xlu2 %511 }
0x1191   :  { %v741_v29 = vpop.eup %740  ;;  %v1051_v61 = vsel %vm32_vm0, %v512_v13, %v508_v17  ;;  %v1059_v23 = vsel %vm32_vm0, %v508_v17, %v512_v13 }
0x1192   :  { %477 = vrot.lane.b32.xlu0 %v741_v29, %s760_s3  ;;  %v616_v62 = vmul.f32 %v1051_v61, %v1051_v61  ;;  %v515_v25 = vmul.f32 %v1059_v23, %v1059_v23 }
0x1194   :  { %v617_v0 = vsel %vm135_vm5, %v616_v62, 0.0  ;;  %v516_v28 = vsel %vm135_vm5, %v515_v25, 0.0 }
0x1198   :  { %v1056_v21 = vpop.permute.xlu2 %482 }
0x119a   :  { %532 = vrot.lane.b32.xlu0 %v957_v39, %s761_s5 }
0x11a0   :  { %v562_v26 = vpop.permute.xlu2 %561 }
0x11a1   :  { %v1065_v30 = vsel %vm32_vm0, %v558_v27, %v562_v26  ;;  %v1071_v33 = vsel %vm32_vm0, %v562_v26, %v558_v27 }
0x11a2   :  { %v565_v31 = vmul.f32 %v1065_v30, %v1065_v30  ;;  %v582_v34 = vmul.f32 %v1071_v33, %v1071_v33 }
0x11a4   :  { %v566_v32 = vsel %vm135_vm5, %v565_v31, 0.0  ;;  %v583_v35 = vsel %vm135_vm5, %v582_v34, 0.0 }
0x1204   :  { %v478_v2 = vpop.permute.xlu0 %477 }
0x1205   :  { %v480_v9 = vmul.f32 %v478_v2, %v463_v8 }
0x1207   :  { %486 = vrot.lane.b32.xlu0 %v480_v9, %s761_s5 }
0x120c   :  { %v533_v43 = vpop.permute.xlu0 %532 }
0x120d   :  { %v539_v11 = vsel %vm32_vm0, %v533_v43, %v537_v10  ;;  %v1044_v12 = vsel %vm32_vm0, %v537_v10, %v533_v43 }
0x120e   :  { %v599_v14 = vmul.f32 %v1044_v12, %v1044_v12  ;;  %v540_v15 = vmul.f32 %v539_v11, %v539_v11 }
0x1210   :  { %v600_v20 = vsel %vm135_vm5, %v599_v14, 0.0  ;;  %v541_v39 = vsel %vm135_vm5, %v540_v15, 0.0 }
0x1211   :  { %601 = vadd.xlane.f32.xlu1 %v600_v20  ;;  %542 = vadd.xlane.f32.xlu2 %v541_v39 }
0x1219   :  { %618 = vadd.xlane.f32.xlu2 %v617_v0 }
0x1231   :  { %517 = vadd.xlane.f32.xlu0 %v516_v28 }
0x1239   :  { %567 = vadd.xlane.f32.xlu0 %v566_v32 }
0x1241   :  { %584 = vadd.xlane.f32.xlu0 %v583_v35 }
0x1279   :  { %v1076_v36 = vpop.permute.xlu0 %486 }
0x127a   :  { %v1081_v37 = vsel %vm32_vm0, %v1076_v36, %v1056_v21  ;;  %v489_v15 = vsel %vm32_vm0, %v1056_v21, %v1076_v36 }
0x127b   :  { %v633_v57 = vmul.f32 %v1081_v37, %v1081_v37 }
0x127d   :  { %v634_v58 = vsel %vm135_vm5, %v633_v57, 0.0 }
0x127e   :  { %635 = vadd.xlane.f32.xlu1 %v634_v58 }
0x1284   :  { %v543_v60 = vpop.xlane.xlu2 %542  ;;  %v602_v47 = vpop.xlane.xlu1 %601 }
0x1285   :  { %v544_v38 = vmax.f32 %v543_v60, 1e-16  ;;  %v603_v50 = vmax.f32 %v602_v47, 1e-16 }
0x1287   :  { %742 = vrsqrt.f32 %v544_v38  ;;  %vm551_vm7 = vweird.f32 %v544_v38  ;;  %vm610_vm13 = vweird.f32 %v603_v50 }
0x1288   :  { %744 = vrsqrt.f32 %v603_v50 }
0x128c   :  { %v619_v51 = vpop.xlane.xlu2 %618 }
0x128d   :  { %v743_v40 = vpop.eup %742  ;;  %v620_v53 = vmax.f32 %v619_v51, 1e-16 }
0x128e   :  { %v546_v41 = vmul.f32 %v743_v40, %v544_v38  ;;  %vm552_vm6 = vweird.f32 %v743_v40  ;;  %v745_v55 = vpop.eup %744 }
0x128f   :  { %vm553_vm8 = vmor %vm551_vm7, %vm552_vm6  ;;  %v605_v56 = vmul.f32 %v745_v55, %v603_v50  ;;  %vm611_vm12 = vweird.f32 %v745_v55  ;;  %vm627_vm4 = vweird.f32 %v620_v53 }
0x1290   :  { %v547_v42 = vmul.f32 %v743_v40, %v546_v41  ;;  %vm612_vm15 = vmor %vm610_vm13, %vm611_vm12  ;;  %vm676_vm12 = vcmask 785408   ;;  %vm674_vm13 = vcmask 523264  }
0x1291   :  { %v606_v1 = vmul.f32 %v745_v55, %v605_v56 }
0x1292   :  { %v548_v44 = vmul.f32 0.5, %v547_v42 }
0x1293   :  { %v607_v7 = vmul.f32 0.5, %v606_v1 }
0x1294   :  { %v549_v45 = vsub.f32 1.5, %v548_v44 }
0x1295   :  { %v608_v22 = vsub.f32 1.5, %v607_v7 }
0x1296   :  { %v550_v46 = vmul.f32 %v743_v40, %v549_v45 }
0x1297   :  { %v609_v13 = vmul.f32 %v745_v55, %v608_v22 }
0x1298   :  { %v554_v48 = vsel %vm553_vm8, %v743_v40, %v550_v46 }
0x1299   :  { %v555_v49 = vmul.f32 %v554_v48, %v539_v11  ;;  %v613_v39 = vsel %vm612_vm15, %v745_v55, %v609_v13 }
0x129a   :  { %v614_v25 = vmul.f32 %v613_v39, %v1044_v12 }
0x129b   :  { %654 = vrot.lane.b32.xlu2 %v555_v49, %s760_s3 }
0x12a4   :  { %v518_v52 = vpop.xlane.xlu0 %517 }
0x12a5   :  { %v519_v54 = vmax.f32 %v518_v52, 1e-16 }
0x12a7   :  { %746 = vrsqrt.f32 %v519_v54  ;;  %vm526_vm10 = vweird.f32 %v519_v54 }
0x12a8   :  { %748 = vrsqrt.f32 %v620_v53 }
0x12ac   :  { %v568_v59 = vpop.xlane.xlu0 %567 }
0x12ad   :  { %v747_v63 = vpop.eup %746  ;;  %v569_v3 = vmax.f32 %v568_v59, 1e-16 }
0x12ae   :  { %v521_v4 = vmul.f32 %v747_v63, %v519_v54  ;;  %v749_v5 = vpop.eup %748  ;;  %vm527_vm9 = vweird.f32 %v747_v63 }
0x12af   :  { %750 = vrsqrt.f32 %v569_v3  ;;  %v622_v8 = vmul.f32 %v749_v5, %v620_v53  ;;  %vm528_vm11 = vmor %vm526_vm10, %vm527_vm9  ;;  %vm576_vm1 = vweird.f32 %v569_v3  ;;  %vm628_vm3 = vweird.f32 %v749_v5 }
0x12b0   :  { %v522_v6 = vmul.f32 %v747_v63, %v521_v4  ;;  %vm629_vm0 = vmor %vm627_vm4, %vm628_vm3 }
0x12b1   :  { %v623_v24 = vmul.f32 %v749_v5, %v622_v8 }
0x12b2   :  { %v523_v16 = vmul.f32 0.5, %v522_v6 }
0x12b3   :  { %v624_v43 = vmul.f32 0.5, %v623_v24 }
0x12b4   :  { %v524_v18 = vsub.f32 1.5, %v523_v16 }
0x12b5   :  { %v751_v19 = vpop.eup %750  ;;  %v625_v20 = vsub.f32 1.5, %v624_v43 }
0x12b6   :  { %v571_v29 = vmul.f32 %v751_v19, %v569_v3  ;;  %v525_v17 = vmul.f32 %v747_v63, %v524_v18  ;;  %vm577_vm14 = vweird.f32 %v751_v19 }
0x12b7   :  { %vm578_vm2 = vmor %vm576_vm1, %vm577_vm14  ;;  %v626_v27 = vmul.f32 %v749_v5, %v625_v20 }
0x12b8   :  { %v572_v2 = vmul.f32 %v751_v19, %v571_v29  ;;  %v529_v9 = vsel %vm528_vm11, %v747_v63, %v525_v17 }
0x12b9   :  { %v530_v10 = vmul.f32 %v529_v9, %v1059_v23  ;;  %v490_v23 = vmul.f32 %v489_v15, %v489_v15  ;;  %v630_v28 = vsel %vm629_vm0, %v749_v5, %v626_v27 }
0x12ba   :  { %v573_v11 = vmul.f32 0.5, %v572_v2  ;;  %v631_v31 = vmul.f32 %v630_v28, %v1051_v61  ;;  %v585_v61 = vpop.xlane.xlu0 %584 }
0x12bb   :  { %650 = vrot.lane.b32.xlu1 %v530_v10, %s761_s5  ;;  %v491_v21 = vsel %vm135_vm5, %v490_v23, 0.0  ;;  %v586_v44 = vmax.f32 %v585_v61, 1e-16 }
0x12bc   :  { %v574_v14 = vsub.f32 1.5, %v573_v11 }
0x12bd   :  { %vm593_vm15 = vweird.f32 %v586_v44 }
0x12be   :  { %v575_v62 = vmul.f32 %v751_v19, %v574_v14 }
0x12c0   :  { %v579_v0 = vsel %vm578_vm2, %v751_v19, %v575_v62 }
0x12c1   :  { %v580_v26 = vmul.f32 %v579_v0, %v1065_v30 }
0x12c3   :  { %662 = vrot.lane.b32.xlu1 %v614_v25, %s761_s5  ;;  %658 = vrot.lane.b32.xlu0 %v580_v26, %s762_s0 }
0x12c4   :  { %492 = vadd.xlane.f32.xlu2 %v491_v21 }
0x12cb   :  { %666 = vrot.lane.b32.xlu0 %v631_v31, %s760_s3 }
0x12f1   :  { %v636_v32 = vpop.xlane.xlu1 %635 }
0x12f2   :  { %v637_v12 = vmax.f32 %v636_v32, 1e-16 }
0x12f4   :  { %752 = vrsqrt.f32 %v637_v12  ;;  %vm644_vm7 = vweird.f32 %v637_v12 }
0x12f5   :  { %v655_v40 = vpop.permute.xlu2 %654 }
0x12fa   :  { %v753_v30 = vpop.eup %752 }
0x12fb   :  { %v639_v34 = vmul.f32 %v753_v30, %v637_v12  ;;  %vm645_vm6 = vweird.f32 %v753_v30 }
0x12fc   :  { %vm646_vm8 = vmor %vm644_vm7, %vm645_vm6 }
0x12fd   :  { %v640_v35 = vmul.f32 %v753_v30, %v639_v34 }
0x12ff   :  { %v641_v36 = vmul.f32 0.5, %v640_v35 }
0x1301   :  { %v642_v57 = vsub.f32 1.5, %v641_v36 }
0x1303   :  { %v643_v58 = vmul.f32 %v753_v30, %v642_v57 }
0x1305   :  { %v647_v60 = vsel %vm646_vm8, %v753_v30, %v643_v58 }
0x1306   :  { %v648_v38 = vmul.f32 %v647_v60, %v1081_v37 }
0x1308   :  { %670 = vrot.lane.b32.xlu2 %v648_v38, %s762_s0 }
0x132d   :  { %v651_v55 = vpop.permute.xlu1 %650 }
0x1335   :  { %v659_v63 = vpop.permute.xlu0 %658  ;;  %v663_v7 = vpop.permute.xlu1 %662 }
0x1337   :  { %v493_v41 = vpop.xlane.xlu2 %492 }
0x1338   :  { %v494_v42 = vmax.f32 %v493_v41, 1e-16 }
0x133a   :  { %754 = vrsqrt.f32 %v494_v42  ;;  %vm501_vm10 = vweird.f32 %v494_v42 }
0x133b   :  { %756 = vrsqrt.f32 %v586_v44 }
0x133d   :  { %v667_v16 = vpop.permute.xlu0 %666 }
0x1340   :  { %v755_v45 = vpop.eup %754 }
0x1341   :  { %v496_v46 = vmul.f32 %v755_v45, %v494_v42  ;;  %v757_v48 = vpop.eup %756  ;;  %vm502_vm9 = vweird.f32 %v755_v45 }
0x1342   :  { %v588_v50 = vmul.f32 %v757_v48, %v586_v44  ;;  %vm503_vm11 = vmor %vm501_vm10, %vm502_vm9  ;;  %vm594_vm14 = vweird.f32 %v757_v48 }
0x1343   :  { %v497_v47 = vmul.f32 %v755_v45, %v496_v46  ;;  %vm595_vm1 = vmor %vm593_vm15, %vm594_vm14 }
0x1344   :  { %v589_v37 = vmul.f32 %v757_v48, %v588_v50 }
0x1345   :  { %v498_v49 = vmul.f32 0.5, %v497_v47 }
0x1346   :  { %v590_v59 = vmul.f32 0.5, %v589_v37 }
0x1347   :  { %v499_v51 = vsub.f32 1.5, %v498_v49 }
0x1348   :  { %v591_v4 = vsub.f32 1.5, %v590_v59 }
0x1349   :  { %v500_v52 = vmul.f32 %v755_v45, %v499_v51 }
0x134a   :  { %v592_v5 = vmul.f32 %v757_v48, %v591_v4 }
0x134b   :  { %v504_v53 = vsel %vm503_vm11, %v755_v45, %v500_v52 }
0x134c   :  { %v505_v54 = vmul.f32 %v504_v53, %v489_v15  ;;  %v596_v6 = vsel %vm595_vm1, %v757_v48, %v592_v5 }
0x134d   :  { %v597_v8 = vmul.f32 %v596_v6, %v1071_v33 }
0x134e   :  { %v673_v56 = vsel %vm135_vm5, %v505_v54, %v651_v55 }
0x134f   :  { %v675_v1 = vsel %vm674_vm13, %v673_v56, %v655_v40  ;;  %v678_v18 = vsel %vm135_vm5, %v597_v8, %v663_v7 }
0x1350   :  { %v677_v3 = vsel %vm676_vm12, %v675_v1, %v659_v63  ;;  %v679_v19 = vsel %vm674_vm13, %v678_v18, %v667_v16 }
0x1351   :  { %681 = vst [vmem:[%s1116_s4] sm:$0xff] %v677_v3 }
0x1362   :  { %v671_v22 = vpop.permute.xlu2 %670 }
0x1363   :  { %v680_v24 = vsel %vm676_vm12, %v679_v19, %v671_v22 }
0x1364   :  { %682 = vst [vmem:[%s1116_s4 + $0x8] sm:$0xff] %v680_v24 }

</bundles_post_ra>
